<compile_context>
chip_gen: v7x
topology: tpu7x:2x2x1
jax: 0.10.0
libtpu: 0.0.40
codegen_flags: <defaults>
</compile_context>

<pallas_src>
import jax
import jax.numpy as jnp
from jax.experimental import pallas as pl
from jax.experimental.pallas import tpu as pltpu

HIDDEN = 256          # width of each head's hidden layers
DEFAULT_BLOCK_B = 1024  # batch tile (multiple of 8; fits v5e 16 MiB scoped VMEM)


def critic_kernel(state_ref, action_ref,
                  w1s_ref, w1a_ref, b14_ref,
                  w2_ref, b2_ref, w5_ref, b5_ref,
                  w36_ref, b36_ref,
                  out_ref):
    """Fused twin-Q MLP for one batch tile. out[:,0]=q1, out[:,1]=q2."""
    # ---- layer 1, both heads at once: (TB, 2*HIDDEN) ----
    hg = (jnp.dot(state_ref[...], w1s_ref[...], preferred_element_type=jnp.float32)
          + jnp.dot(action_ref[...], w1a_ref[...], preferred_element_type=jnp.float32)
          + b14_ref[...])
    hg = jnp.maximum(hg, 0.0)

    # ---- layer 2, per head (two 256x256 dots; avoids doubling FLOPs) ----
    h = hg[:, :HIDDEN]
    g = hg[:, HIDDEN:]
    h = jnp.maximum(
        jnp.dot(h, w2_ref[...], preferred_element_type=jnp.float32) + b2_ref[...], 0.0)
    g = jnp.maximum(
        jnp.dot(g, w5_ref[...], preferred_element_type=jnp.float32) + b5_ref[...], 0.0)

    # ---- layer 3, both heads at once via block-diagonal (512, 2) weight ----
    hg2 = jnp.concatenate([h, g], axis=1)                       # (TB, 2*HIDDEN)
    out_ref[...] = (jnp.dot(hg2, w36_ref[...], preferred_element_type=jnp.float32)
                    + b36_ref[...]).astype(out_ref.dtype)


def init_critic_params(key, state_dim, action_dim):
    """nn.Linear-style init; weights stored (in_features, out_features)."""
    in_dim = state_dim + action_dim
    dims = [(in_dim, HIDDEN), (HIDDEN, HIDDEN), (HIDDEN, 1),   # l1, l2, l3
            (in_dim, HIDDEN), (HIDDEN, HIDDEN), (HIDDEN, 1)]   # l4, l5, l6
    names = ["1", "2", "3", "4", "5", "6"]
    params = {}
    keys = jax.random.split(key, 2 * len(dims))
    for i, ((fan_in, fan_out), n) in enumerate(zip(dims, names)):
        bound = 1.0 / jnp.sqrt(jnp.float32(fan_in))
        params[f"w{n}"] = jax.random.uniform(
            keys[2 * i], (fan_in, fan_out), jnp.float32, -bound, bound)
        params[f"b{n}"] = jax.random.uniform(
            keys[2 * i + 1], (1, fan_out), jnp.float32, -bound, bound)
    return params


def pack_critic_params(params, state_dim, dtype=jnp.float32):
    """One-time packing of per-layer params into the fused kernel layout.

    dtype=jnp.bfloat16 halves weight HBM traffic and enables the 256-wide bf16
    MXU path on v6e/v7x (re-validate with ~1e-2 tolerance if used).
    Biases are kept f32 (added after f32 accumulation).
    """
    w14 = jnp.concatenate([params["w1"], params["w4"]], axis=1)   # (S+A, 512)
    b14 = jnp.concatenate([params["b1"], params["b4"]], axis=1)   # (1, 512)
    w36 = jnp.zeros((2 * HIDDEN, 2), jnp.float32)                 # block-diag(w3, w6)
    w36 = w36.at[:HIDDEN, 0:1].set(params["w3"])
    w36 = w36.at[HIDDEN:, 1:2].set(params["w6"])
    b36 = jnp.concatenate([params["b3"], params["b6"]], axis=1)   # (1, 2)
    return {
        "w1s": w14[:state_dim].astype(dtype),   # (S, 512)
        "w1a": w14[state_dim:].astype(dtype),   # (A, 512)
        "b14": b14.astype(jnp.float32),
        "w2": params["w2"].astype(dtype),
        "b2": params["b2"].astype(jnp.float32),
        "w5": params["w5"].astype(dtype),
        "b5": params["b5"].astype(jnp.float32),
        "w36": w36.astype(dtype),
        "b36": b36.astype(jnp.float32),
    }


def critic_forward(state, action, packed, *, block_b=DEFAULT_BLOCK_B):
    """Pallas implementation of Critic.forward -> (q1, q2), each (B, 1)."""
    B, S = state.shape
    A = action.shape[1]

    # Single block for small batches (block == full dim is always legal);
    # otherwise a fixed batch tile (multiple of 8) that pipelines/parallelizes.
    tb = B if B <= block_b else block_b
    grid = (pl.cdiv(B, tb),)

    batch_map = lambda i: (i, 0)   # tiled along batch
    pinned = lambda i: (0, 0)      # resident in VMEM across all grid steps

    weight_keys = ("w1s", "w1a", "b14", "w2", "b2", "w5", "b5", "w36", "b36")
    in_specs = [pl.BlockSpec((tb, S), batch_map),
                pl.BlockSpec((tb, A), batch_map)]
    in_specs += [pl.BlockSpec(packed[k].shape, pinned) for k in weight_keys]
    out_spec = pl.BlockSpec((tb, 2), batch_map)

    flops = 2 * B * ((S + A) * 2 * HIDDEN + 2 * HIDDEN * HIDDEN + 2 * HIDDEN * 2)
    bytes_accessed = 4 * B * (S + A + 2) + sum(
        int(packed[k].size) * packed[k].dtype.itemsize for k in weight_keys)

    out = pl.pallas_call(
        critic_kernel,
        out_shape=jax.ShapeDtypeStruct((B, 2), jnp.float32),
        grid=grid,
        in_specs=in_specs,
        out_specs=out_spec,
        compiler_params=pltpu.CompilerParams(
            dimension_semantics=("parallel",)),
        cost_estimate=pl.CostEstimate(
            flops=flops, transcendentals=0, bytes_accessed=bytes_accessed),
    )(state, action, *(packed[k] for k in weight_keys))

    return out[:, 0:1], out[:, 1:2]


def critic_forward_ref(state, action, params):
    """Pure-JAX reference (mirrors the PyTorch module exactly)."""
    sa = jnp.concatenate([state, action], axis=1)

    def head(w_a, b_a, w_b, b_b, w_c, b_c):
        h = jnp.maximum(sa @ w_a + b_a, 0.0)
        h = jnp.maximum(h @ w_b + b_b, 0.0)
        return h @ w_c + b_c

    q1 = head(params["w1"], params["b1"], params["w2"], params["b2"],
              params["w3"], params["b3"])
    q2 = head(params["w4"], params["b4"], params["w5"], params["b5"],
              params["w6"], params["b6"])
    return q1, q2


if __name__ == "__main__":
    key = jax.random.PRNGKey(0)
    k_param, k_state, k_action = jax.random.split(key, 3)

    state_dim = 8     # state_dim[0] in the PyTorch module
    action_dim = 4    # action_dim[0] in the PyTorch module

    params = init_critic_params(k_param, state_dim, action_dim)
    packed = pack_critic_params(params, state_dim)   # one-time packing

    # --- small batch (single-block path) ---
    batch = 2
    state = jax.random.normal(k_state, (batch, state_dim), jnp.float32)
    action = jax.random.normal(k_action, (batch, action_dim), jnp.float32)

    q1, q2 = critic_forward(state, action, packed)
    jax.block_until_ready((q1, q2))

    q1_ref, q2_ref = critic_forward_ref(state, action, params)
    assert q1.shape == (batch, 1) and q2.shape == (batch, 1)
    assert jnp.allclose(q1, q1_ref, atol=1e-4, rtol=1e-4)
    assert jnp.allclose(q2, q2_ref, atol=1e-4, rtol=1e-4)

    # --- larger batch exercising the batch grid (incl. a padded last tile) ---
    batch2 = 2050
    ks2, ka2 = jax.random.split(jax.random.PRNGKey(1), 2)
    state2 = jax.random.normal(ks2, (batch2, state_dim), jnp.float32)
    action2 = jax.random.normal(ka2, (batch2, action_dim), jnp.float32)

    q1b, q2b = critic_forward(state2, action2, packed)
    jax.block_until_ready((q1b, q2b))
    q1b_ref, q2b_ref = critic_forward_ref(state2, action2, params)
    assert jnp.allclose(q1b, q1b_ref, atol=1e-4, rtol=1e-4)
    assert jnp.allclose(q2b, q2b_ref, atol=1e-4, rtol=1e-4)

    print("KERNEL_OK")
</pallas_src>

<mosaic_0001>
module attributes {stable_mosaic.version = 11 : i64} {
  func.func @critic_kernel(%arg0: i32, %arg1: memref<2x8xf32, #tpu.memory_space<vmem>>, %arg2: memref<2x4xf32, #tpu.memory_space<vmem>>, %arg3: memref<8x512xf32, #tpu.memory_space<vmem>>, %arg4: memref<4x512xf32, #tpu.memory_space<vmem>>, %arg5: memref<1x512xf32, #tpu.memory_space<vmem>>, %arg6: memref<256x256xf32, #tpu.memory_space<vmem>>, %arg7: memref<1x256xf32, #tpu.memory_space<vmem>>, %arg8: memref<256x256xf32, #tpu.memory_space<vmem>>, %arg9: memref<1x256xf32, #tpu.memory_space<vmem>>, %arg10: memref<512x2xf32, #tpu.memory_space<vmem>>, %arg11: memref<1x2xf32, #tpu.memory_space<vmem>>, %arg12: memref<2x2xf32, #tpu.memory_space<vmem>>) attributes {dimension_semantics = [#tpu.dimension_semantics<parallel>], iteration_bounds = array<i64: 1>, scalar_prefetch = 0 : i64, scratch_operands = 0 : i64, tpu.core_type = #tpu.core_type<tc>, window_params = [{transform_indices = @transform_0, window_bounds = array<i64: 2, 8>}, {transform_indices = @transform_1, window_bounds = array<i64: 2, 4>}, {pipeline_mode = #tpu.pipeline_mode<synchronous>, transform_indices = @transform_2, window_bounds = array<i64: 8, 512>}, {pipeline_mode = #tpu.pipeline_mode<synchronous>, transform_indices = @transform_3, window_bounds = array<i64: 4, 512>}, {pipeline_mode = #tpu.pipeline_mode<synchronous>, transform_indices = @transform_4, window_bounds = array<i64: 1, 512>}, {pipeline_mode = #tpu.pipeline_mode<synchronous>, transform_indices = @transform_5, window_bounds = array<i64: 256, 256>}, {pipeline_mode = #tpu.pipeline_mode<synchronous>, transform_indices = @transform_6, window_bounds = array<i64: 1, 256>}, {pipeline_mode = #tpu.pipeline_mode<synchronous>, transform_indices = @transform_7, window_bounds = array<i64: 256, 256>}, {pipeline_mode = #tpu.pipeline_mode<synchronous>, transform_indices = @transform_8, window_bounds = array<i64: 1, 256>}, {pipeline_mode = #tpu.pipeline_mode<synchronous>, transform_indices = @transform_9, window_bounds = array<i64: 512, 2>}, {pipeline_mode = #tpu.pipeline_mode<synchronous>, transform_indices = @transform_10, window_bounds = array<i64: 1, 2>}, {transform_indices = @transform_11, window_bounds = array<i64: 2, 2>}]} {
    %c0 = arith.constant 0 : index
    %c0_0 = arith.constant 0 : index
    %0 = vector.load %arg1[%c0, %c0_0] : memref<2x8xf32, #tpu.memory_space<vmem>>, vector<2x8xf32>
    %c0_1 = arith.constant 0 : index
    %c0_2 = arith.constant 0 : index
    %1 = vector.load %arg3[%c0_1, %c0_2] : memref<8x512xf32, #tpu.memory_space<vmem>>, vector<8x512xf32>
    %cst = arith.constant dense<0.000000e+00> : vector<2x512xf32>
    %2 = tpu.matmul %0, %1, %cst {dimension_numbers = #tpu.dot_dimension_numbers<[1], [0], [0], [1], [0, 0, 1, 1], [], []>} : vector<2x8xf32>, vector<8x512xf32>, vector<2x512xf32> -> vector<2x512xf32>
    %c0_3 = arith.constant 0 : index
    %c0_4 = arith.constant 0 : index
    %3 = vector.load %arg2[%c0_3, %c0_4] : memref<2x4xf32, #tpu.memory_space<vmem>>, vector<2x4xf32>
    %c0_5 = arith.constant 0 : index
    %c0_6 = arith.constant 0 : index
    %4 = vector.load %arg4[%c0_5, %c0_6] : memref<4x512xf32, #tpu.memory_space<vmem>>, vector<4x512xf32>
    %cst_7 = arith.constant dense<0.000000e+00> : vector<2x512xf32>
    %5 = tpu.matmul %3, %4, %cst_7 {dimension_numbers = #tpu.dot_dimension_numbers<[1], [0], [0], [1], [0, 0, 1, 1], [], []>} : vector<2x4xf32>, vector<4x512xf32>, vector<2x512xf32> -> vector<2x512xf32>
    %6 = arith.addf %2, %5 : vector<2x512xf32>
    %c0_8 = arith.constant 0 : index
    %c0_9 = arith.constant 0 : index
    %7 = vector.load %arg5[%c0_8, %c0_9] : memref<1x512xf32, #tpu.memory_space<vmem>>, vector<1x512xf32>
    %8 = vector.broadcast %7 : vector<1x512xf32> to vector<2x512xf32>
    %9 = arith.addf %6, %8 : vector<2x512xf32>
    %cst_10 = arith.constant 0.000000e+00 : f32
    %10 = vector.broadcast %cst_10 : f32 to vector<2x512xf32>
    %11 = arith.maximumf %9, %10 : vector<2x512xf32>
    %12 = vector.extract_strided_slice %11 {offsets = [0, 0], sizes = [2, 256], strides = [1, 1]} : vector<2x512xf32> to vector<2x256xf32>
    %13 = vector.extract_strided_slice %11 {offsets = [0, 256], sizes = [2, 256], strides = [1, 1]} : vector<2x512xf32> to vector<2x256xf32>
    %c0_11 = arith.constant 0 : index
    %c0_12 = arith.constant 0 : index
    %14 = vector.load %arg6[%c0_11, %c0_12] : memref<256x256xf32, #tpu.memory_space<vmem>>, vector<256x256xf32>
    %cst_13 = arith.constant dense<0.000000e+00> : vector<2x256xf32>
    %15 = tpu.matmul %12, %14, %cst_13 {dimension_numbers = #tpu.dot_dimension_numbers<[1], [0], [0], [1], [0, 0, 1, 1], [], []>} : vector<2x256xf32>, vector<256x256xf32>, vector<2x256xf32> -> vector<2x256xf32>
    %c0_14 = arith.constant 0 : index
    %c0_15 = arith.constant 0 : index
    %16 = vector.load %arg7[%c0_14, %c0_15] : memref<1x256xf32, #tpu.memory_space<vmem>>, vector<1x256xf32>
    %17 = vector.broadcast %16 : vector<1x256xf32> to vector<2x256xf32>
    %18 = arith.addf %15, %17 : vector<2x256xf32>
    %cst_16 = arith.constant 0.000000e+00 : f32
    %19 = vector.broadcast %cst_16 : f32 to vector<2x256xf32>
    %20 = arith.maximumf %18, %19 : vector<2x256xf32>
    %c0_17 = arith.constant 0 : index
    %c0_18 = arith.constant 0 : index
    %21 = vector.load %arg8[%c0_17, %c0_18] : memref<256x256xf32, #tpu.memory_space<vmem>>, vector<256x256xf32>
    %cst_19 = arith.constant dense<0.000000e+00> : vector<2x256xf32>
    %22 = tpu.matmul %13, %21, %cst_19 {dimension_numbers = #tpu.dot_dimension_numbers<[1], [0], [0], [1], [0, 0, 1, 1], [], []>} : vector<2x256xf32>, vector<256x256xf32>, vector<2x256xf32> -> vector<2x256xf32>
    %c0_20 = arith.constant 0 : index
    %c0_21 = arith.constant 0 : index
    %23 = vector.load %arg9[%c0_20, %c0_21] : memref<1x256xf32, #tpu.memory_space<vmem>>, vector<1x256xf32>
    %24 = vector.broadcast %23 : vector<1x256xf32> to vector<2x256xf32>
    %25 = arith.addf %22, %24 : vector<2x256xf32>
    %cst_22 = arith.constant 0.000000e+00 : f32
    %26 = vector.broadcast %cst_22 : f32 to vector<2x256xf32>
    %27 = arith.maximumf %25, %26 : vector<2x256xf32>
    %28 = tpu.concatenate %20, %27 in 1 : vector<2x256xf32>, vector<2x256xf32> -> vector<2x512xf32>
    %c0_23 = arith.constant 0 : index
    %c0_24 = arith.constant 0 : index
    %29 = vector.load %arg10[%c0_23, %c0_24] : memref<512x2xf32, #tpu.memory_space<vmem>>, vector<512x2xf32>
    %cst_25 = arith.constant dense<0.000000e+00> : vector<2x2xf32>
    %30 = tpu.matmul %28, %29, %cst_25 {dimension_numbers = #tpu.dot_dimension_numbers<[1], [0], [0], [1], [0, 0, 1, 1], [], []>} : vector<2x512xf32>, vector<512x2xf32>, vector<2x2xf32> -> vector<2x2xf32>
    %c0_26 = arith.constant 0 : index
    %c0_27 = arith.constant 0 : index
    %31 = vector.load %arg11[%c0_26, %c0_27] : memref<1x2xf32, #tpu.memory_space<vmem>>, vector<1x2xf32>
    %32 = vector.broadcast %31 : vector<1x2xf32> to vector<2x2xf32>
    %33 = arith.addf %30, %32 : vector<2x2xf32>
    %c0_28 = arith.constant 0 : index
    %c0_29 = arith.constant 0 : index
    %34 = vector.load %arg12[%c0_28, %c0_29] : memref<2x2xf32, #tpu.memory_space<vmem>>, vector<2x2xf32>
    tpu.vector_store %arg12[%c0_28, %c0_29], %33 {strides = array<i32>} : memref<2x2xf32, #tpu.memory_space<vmem>>, vector<2x2xf32>,
    return
  }
  func.func @transform_0(%arg0: i32) -> (i32, i32) {
    %c0_i32 = arith.constant 0 : i32
    %c0_i32_0 = arith.constant 0 : i32
    return %arg0, %c0_i32 : i32, i32
  }
  func.func @transform_1(%arg0: i32) -> (i32, i32) {
    %c0_i32 = arith.constant 0 : i32
    %c0_i32_0 = arith.constant 0 : i32
    return %arg0, %c0_i32 : i32, i32
  }
  func.func @transform_2(%arg0: i32) -> (i32, i32) {
    %c0_i32 = arith.constant 0 : i32
    %c0_i32_0 = arith.constant 0 : i32
    %c0_i32_1 = arith.constant 0 : i32
    return %c0_i32, %c0_i32_0 : i32, i32
  }
  func.func @transform_3(%arg0: i32) -> (i32, i32) {
    %c0_i32 = arith.constant 0 : i32
    %c0_i32_0 = arith.constant 0 : i32
    %c0_i32_1 = arith.constant 0 : i32
    return %c0_i32, %c0_i32_0 : i32, i32
  }
  func.func @transform_4(%arg0: i32) -> (i32, i32) {
    %c0_i32 = arith.constant 0 : i32
    %c0_i32_0 = arith.constant 0 : i32
    %c0_i32_1 = arith.constant 0 : i32
    return %c0_i32, %c0_i32_0 : i32, i32
  }
  func.func @transform_5(%arg0: i32) -> (i32, i32) {
    %c0_i32 = arith.constant 0 : i32
    %c0_i32_0 = arith.constant 0 : i32
    %c0_i32_1 = arith.constant 0 : i32
    return %c0_i32, %c0_i32_0 : i32, i32
  }
  func.func @transform_6(%arg0: i32) -> (i32, i32) {
    %c0_i32 = arith.constant 0 : i32
    %c0_i32_0 = arith.constant 0 : i32
    %c0_i32_1 = arith.constant 0 : i32
    return %c0_i32, %c0_i32_0 : i32, i32
  }
  func.func @transform_7(%arg0: i32) -> (i32, i32) {
    %c0_i32 = arith.constant 0 : i32
    %c0_i32_0 = arith.constant 0 : i32
    %c0_i32_1 = arith.constant 0 : i32
    return %c0_i32, %c0_i32_0 : i32, i32
  }
  func.func @transform_8(%arg0: i32) -> (i32, i32) {
    %c0_i32 = arith.constant 0 : i32
    %c0_i32_0 = arith.constant 0 : i32
    %c0_i32_1 = arith.constant 0 : i32
    return %c0_i32, %c0_i32_0 : i32, i32
  }
  func.func @transform_9(%arg0: i32) -> (i32, i32) {
    %c0_i32 = arith.constant 0 : i32
    %c0_i32_0 = arith.constant 0 : i32
    %c0_i32_1 = arith.constant 0 : i32
    return %c0_i32, %c0_i32_0 : i32, i32
  }
  func.func @transform_10(%arg0: i32) -> (i32, i32) {
    %c0_i32 = arith.constant 0 : i32
    %c0_i32_0 = arith.constant 0 : i32
    %c0_i32_1 = arith.constant 0 : i32
    return %c0_i32, %c0_i32_0 : i32, i32
  }
  func.func @transform_11(%arg0: i32) -> (i32, i32) {
    %c0_i32 = arith.constant 0 : i32
    %c0_i32_0 = arith.constant 0 : i32
    return %arg0, %c0_i32 : i32, i32
  }
}

</mosaic_0001>

<bundles_post_ra>
// kernel: tpu_custom_call.1
= control target key start
LH: loop header
LB: loop body
LE: loop exit
PB: predicated region body
PF: predicated region fallthrough
CT: control target
= control target key end

     0   :  { %16 = vsyncpa [#allocation3], 0  ;;  %s1909_s0 = inlined_call_operand.vmem [shape: f32[2,8], index: 0, kind: input, shape index: {}]   ;;  %s1910_s1 = inlined_call_operand.hbm [shape: f32[2,4], index: 1, kind: input, shape index: {}]   ;;  %s1911_s2 = inlined_call_operand.hbm [shape: f32[8,512], index: 2, kind: input, shape index: {}]   ;;  %s1912_s3 = inlined_call_operand.vmem [shape: f32[4,512], index: 3, kind: input, shape index: {}]   ;;  %s1913_s4 = inlined_call_operand.vmem [shape: f32[1,512], index: 4, kind: input, shape index: {}]   ;;  %s1914_s5 = inlined_call_operand.vmem [shape: f32[256,256], index: 5, kind: input, shape index: {}]   ;;  %s1915_s6 = inlined_call_operand.hbm [shape: f32[1,256], index: 6, kind: input, shape index: {}]   ;;  %s1916_s7 = inlined_call_operand.hbm [shape: f32[256,256], index: 7, kind: input, shape index: {}]   ;;  %s1917_s8 = inlined_call_operand.vmem [shape: f32[1,256], index: 8, kind: input, shape index: {}]   ;;  %s1918_s9 = inlined_call_operand.vmem [shape: f32[512,2], index: 9, kind: input, shape index: {}]   ;;  %s1919_s10 = inlined_call_operand.vmem [shape: f32[1,2], index: 10, kind: input, shape index: {}]   ;;  %s1920_s11 = inlined_call_operand.hbm [shape: f32[2,2], index: 11, kind: output, shape index: {}]  }
   0x1   :  { %17 = vsyncpa [#allocation6], 0 }
   0x2   :  { %18 = vsyncpa [#allocation9], 0 }
   0x3   :  { %19 = vsyncpa [#allocation4], 0  ;;  %s1362_s17 = smov [#allocation5]   ;;  %s1363_s19 = smov [#allocation2]  }
   0x4   :  { %s38_s18 = sshll.u32 %s1362_s17, 4  ;;  %s28_s20 = sshll.u32 %s1363_s19, 4  ;;  %s39_s18 = int_to_ptr.vmem [resolvable:$true] %s38_s18  ;;  %s29_s20 = int_to_ptr.vmem [resolvable:$true] %s28_s20 }
   0x5   :  { %s1244_s23 = scalar_lea.hbm %s1911_s2, 512 }
   0x6   :  { %p1245_p0 = scmp.ne.s32.totalorder %s1911_s2, %s1244_s23  ;;  %p1248_p1 = scmp.lt.u32.totalorder %s1244_s23, %s1911_s2 }
   0x8   :  { %p1250_p2 = pnand %p1248_p1, %p1245_p0 }
   0xa   :  { %1253 = shalt.err (!%p1250_p2)
}
   0xb   :  { %s1254_s28 = scalar_lea.vmem %s39_s18, 512  ;;  %p1259_p4 = scmp.lt.s32.totalorder %s39_s18, %s39_s18 }
   0xc   :  { %p1255_p3 = scmp.ne.s32.totalorder %s39_s18, %s1254_s28  ;;  %p1260_p5 = scmp.lt.s32.totalorder %s1254_s28, %s1254_s28 }
   0xe   :  { %p1261_p6 = por %p1260_p5, %p1259_p4 }
  0x10   :  { %p1262_p7 = pnand %p1261_p6, %p1255_p3 }
  0x12   :  { %1265 = shalt.err (!%p1262_p7)
}
  0x13   :  { %41 = dma.hbm_to_vmem [thread:$0]  %s1911_s2, 512, %s39_s18, [#allocation6]  }
  0x14   :  { %s1266_s14 = scalar_lea.hbm %s1910_s1, 32 }
  0x15   :  { %p1267_p8 = scmp.ne.s32.totalorder %s1910_s1, %s1266_s14  ;;  %p1270_p9 = scmp.lt.u32.totalorder %s1266_s14, %s1910_s1 }
  0x17   :  { %p1272_p10 = pnand %p1270_p9, %p1267_p8 }
  0x19   :  { %1275 = shalt.err (!%p1272_p10)
}
  0x1a   :  { %s1276_s21 = scalar_lea.vmem %s29_s20, 32  ;;  %p1281_p12 = scmp.lt.s32.totalorder %s29_s20, %s29_s20 }
  0x1b   :  { %p1277_p11 = scmp.ne.s32.totalorder %s29_s20, %s1276_s21  ;;  %p1282_p13 = scmp.lt.s32.totalorder %s1276_s21, %s1276_s21 }
  0x1d   :  { %p1283_p0 = por %p1282_p13, %p1281_p12 }
  0x1f   :  { %p1284_p1 = pnand %p1283_p0, %p1277_p11 }
  0x21   :  { %1287 = shalt.err (!%p1284_p1)
}
  0x22   :  { %31 = dma.hbm_to_vmem [thread:$0]  %s1910_s1, 32, %s29_s20, [#allocation3]  }
  0x23   :  { %s1364_s22 = smov [#allocation7]   ;;  %s1365_s24 = smov [#allocation8]  }
  0x24   :  { %s54_s23 = sshll.u32 %s1364_s22, 4  ;;  %s63_s25 = sshll.u32 %s1365_s24, 4  ;;  %s55_s23 = int_to_ptr.vmem [resolvable:$true] %s54_s23  ;;  %s1454_s25 = int_to_ptr.vmem [resolvable:$true] %s63_s25 }
  0x25   :  { %s1288_s28 = scalar_lea.hbm %s1915_s6, 32 }
  0x26   :  { %p1289_p2 = scmp.ne.s32.totalorder %s1915_s6, %s1288_s28  ;;  %p1292_p3 = scmp.lt.u32.totalorder %s1288_s28, %s1915_s6 }
  0x28   :  { %p1294_p4 = pnand %p1292_p3, %p1289_p2 }
  0x2a   :  { %1297 = shalt.err (!%p1294_p4)
}
  0x2b   :  { %s1298_s1 = scalar_lea.vmem %s55_s23, 32  ;;  %p1303_p6 = scmp.lt.s32.totalorder %s55_s23, %s55_s23 }
  0x2c   :  { %p1299_p5 = scmp.ne.s32.totalorder %s55_s23, %s1298_s1  ;;  %p1304_p7 = scmp.lt.s32.totalorder %s1298_s1, %s1298_s1 }
  0x2e   :  { %p1305_p8 = por %p1304_p7, %p1303_p6 }
  0x30   :  { %p1306_p9 = pnand %p1305_p8, %p1299_p5 }
  0x32   :  { %1309 = shalt.err (!%p1306_p9)
}
  0x33   :  { %57 = dma.hbm_to_vmem [thread:$0]  %s1915_s6, 32, %s55_s23, [#allocation6]  }
  0x34   :  { %s1310_s17 = scalar_lea.hbm %s1916_s7, 8192 }
  0x35   :  { %p1311_p10 = scmp.ne.s32.totalorder %s1916_s7, %s1310_s17  ;;  %p1314_p11 = scmp.lt.u32.totalorder %s1310_s17, %s1916_s7 }
  0x37   :  { %p1316_p12 = pnand %p1314_p11, %p1311_p10 }
  0x39   :  { %1319 = shalt.err (!%p1316_p12)
}
  0x3a   :  { %s1320_s22 = scalar_lea.vmem %s1454_s25, 8192  ;;  %p1325_p0 = scmp.lt.s32.totalorder %s1454_s25, %s1454_s25 }
  0x3b   :  { %p1321_p13 = scmp.ne.s32.totalorder %s1454_s25, %s1320_s22  ;;  %p1326_p1 = scmp.lt.s32.totalorder %s1320_s22, %s1320_s22 }
  0x3d   :  { %p1327_p2 = por %p1326_p1, %p1325_p0 }
  0x3f   :  { %p1328_p3 = pnand %p1327_p2, %p1321_p13 }
  0x41   :  { %1331 = shalt.err (!%p1328_p3)
}
  0x42   :  { %s1366_s6 = smov 256   ;;  %s1367_s23 = smov 16  }
  0x43   :  { %69 = dma.hbm_to_vmem [thread:$0]  %s1916_s7, 8192, %s1454_s25, [#allocation9], %s1366_s6, %s1366_s6, %s1367_s23  }
  0x44   :  { %1354 = dma.done.wait [#allocation3], 32  }
  0x45   :  { %1355 = vsyncadd [#allocation3], 4294967264 }
  0x46   :  { %1356 = dma.done.wait [#allocation6], 544  }
  0x47   :  { %1357 = vsyncadd [#allocation6], 4294966752 }
  0x48   :  { %1358 = dma.done.wait [#allocation9], 8192  }
  0x49   :  { %1359 = vsyncadd [#allocation9], 4294959104  ;;  %v1368_v0 = vmov 0.0   ;;  %v94_v1 = vld [vmem:[%s1912_s3] sm:$0xff]  ;;  %vm104_vm0 = vcmask 1043456   ;;  %v95_v2 = vld [vmem:[%s1912_s3 + $0x8] sm:$0xff] }
  0x4a   :  { %177 = vmatprep.mubr.f32.mxu0 %v1368_v0  ;;  %248 = vmatprep.mubr.f32.mxu1 %v1368_v0  ;;  %v98_v3 = vcombine.high %v94_v1, %v94_v1  ;;  %v99_v4 = vcombine.high %v95_v2, %v95_v2  ;;  %v93_v5 = vld [vmem:[#allocation2] sm:$0x3]  ;;  %vm100_vm1 = vcmask 31744   ;;  %v90_v6 = vld [vmem:[#allocation5 + $0x8] sm:$0xff]  ;;  %v434_v9 = vld [vmem:[%s1914_s5 + $0x18] sm:$0xff]  ;;  %vm255_vm2 = vcmask 64512  }
  0x4b   :  { %v92_v7 = vld [vmem:[#allocation5 + $0x18] sm:$0xff]  ;;  %v432_v8 = vld [vmem:[%s1914_s5 + $0x8] sm:$0xff]  ;;  %v91_v13 = vld [vmem:[#allocation5 + $0x10] sm:$0xff]  ;;  %s1369_s12 = smov [#allocation10]   ;;  %vm940_vm3 = vcmask 9216  }
  0x4c   :  { %959 = vmatprep.subr.msk.mxu0 %vm104_vm0, %v98_v3  ;;  %962 = vmatprep.subr.msk.mxu1 %vm104_vm0, %v99_v4  ;;  %v581_v10 = vld [vmem:[#allocation8 + $0x8] sm:$0xff]  ;;  %v583_v11 = vld [vmem:[#allocation8 + $0x18] sm:$0xff]  ;;  %v1038_v14 = vpack.c.bf16 %v434_v9, %v432_v8  ;;  %v580_v18 = vld [vmem:[#allocation8] sm:$0xff]  ;;  %s948_s13 = sshll.u32 %s1369_s12, 4  ;;  %s949_s13 = int_to_ptr.vmem [resolvable:$true] %s948_s13 }
  0x4d   :  { %960 = vmatpush1.msk.msra.mxu0 %vm104_vm0, %v94_v1  ;;  %963 = vmatpush1.msk.msra.mxu1 %vm104_vm0, %v95_v2  ;;  %v89_v12 = vld [vmem:[#allocation5] sm:$0xff]  ;;  %v1102_v15 = vpack.c.bf16 %v583_v11, %v581_v10  ;;  %v433_v17 = vld [vmem:[%s1914_s5 + $0x10] sm:$0xff]  ;;  %v438_v21 = vld [vmem:[%s1914_s5 + $0x38] sm:$0xff]  ;;  %s1332_s3 = scalar_lea.vmem %s949_s13, 32  ;;  %p1337_p5 = scmp.lt.s32.totalorder %s949_s13, %s949_s13 }
  0x4e   :  { %961 = vmatmul.mubr.msk.f32.vlgmr.msra.gmra.mrb[0].mxu0 %vm100_vm1, %v93_v5  ;;  %964 = vmatmul.mubr.msk.f32.vlgmr.msra.gmra.mrb[0].mxu1 %vm100_vm1, %v93_v5  ;;  %v431_v16 = vld [vmem:[%s1914_s5] sm:$0xff]  ;;  %v582_v19 = vld [vmem:[#allocation8 + $0x10] sm:$0xff]  ;;  %v436_v20 = vld [vmem:[%s1914_s5 + $0x28] sm:$0xff]  ;;  %p1333_p4 = scmp.ne.s32.totalorder %s949_s13, %s1332_s3  ;;  %p1338_p6 = scmp.lt.s32.totalorder %s1332_s3, %s1332_s3 }
  0x4f   :  { %259 = vmatprep.subr.mxu0 %v90_v6  ;;  %330 = vmatprep.subr.mxu1 %v92_v7  ;;  %v585_v22 = vld [vmem:[#allocation8 + $0x28] sm:$0xff]  ;;  %v587_v23 = vld [vmem:[#allocation8 + $0x38] sm:$0xff]  ;;  %v1040_v25 = vpack.c.bf16 %v433_v17, %v431_v16  ;;  %v1104_v26 = vpack.c.bf16 %v582_v19, %v580_v18  ;;  %v1042_v29 = vpack.c.bf16 %v438_v21, %v436_v20  ;;  %v584_v31 = vld [vmem:[#allocation8 + $0x20] sm:$0xff] }
  0x50   :  { %260 = vmatpush1.msra.mxu0 %v89_v12  ;;  %331 = vmatpush1.msra.mxu1 %v91_v13  ;;  %v88_v24 = vld [vmem:[%s1909_s0] sm:$0x3]  ;;  %v437_v28 = vld [vmem:[%s1914_s5 + $0x30] sm:$0xff]  ;;  %v1106_v30 = vpack.c.bf16 %v587_v23, %v585_v22  ;;  %v440_v33 = vld [vmem:[%s1914_s5 + $0x48] sm:$0xff]  ;;  %p1339_p7 = por %p1338_p6, %p1337_p5 }
  0x51   :  { %323 = vmatprep.mubr.f32.mxu0 %v1368_v0  ;;  %394 = vmatprep.mubr.f32.mxu1 %v1368_v0  ;;  %v435_v27 = vld [vmem:[%s1914_s5 + $0x20] sm:$0xff]  ;;  %v586_v32 = vld [vmem:[#allocation8 + $0x30] sm:$0xff]  ;;  %v589_v35 = vld [vmem:[#allocation8 + $0x48] sm:$0xff] }
  0x52   :  { %1039 = vmatprep.subr.bf16.mxu0 %v1038_v14  ;;  %1103 = vmatprep.subr.bf16.mxu1 %v1102_v15  ;;  %v442_v34 = vld [vmem:[%s1914_s5 + $0x58] sm:$0xff]  ;;  %v1044_v37 = vpack.c.bf16 %v437_v28, %v435_v27  ;;  %v1108_v38 = vpack.c.bf16 %v586_v32, %v584_v31  ;;  %v439_v39 = vld [vmem:[%s1914_s5 + $0x40] sm:$0xff]  ;;  %v441_v40 = vld [vmem:[%s1914_s5 + $0x50] sm:$0xff]  ;;  %p1340_p8 = pnand %p1339_p7, %p1333_p4 }
  0x53   :  { %v591_v36 = vld [vmem:[#allocation8 + $0x58] sm:$0xff]  ;;  %v1046_v41 = vpack.c.bf16 %v442_v34, %v440_v33  ;;  %v588_v43 = vld [vmem:[#allocation8 + $0x40] sm:$0xff]  ;;  %v590_v44 = vld [vmem:[#allocation8 + $0x50] sm:$0xff]  ;;  %v1048_v49 = vpack.c.bf16 %v441_v40, %v439_v39 }
  0x54   :  { %v1110_v42 = vpack.c.bf16 %v591_v36, %v589_v35  ;;  %v444_v45 = vld [vmem:[%s1914_s5 + $0x68] sm:$0xff]  ;;  %v446_v46 = vld [vmem:[%s1914_s5 + $0x78] sm:$0xff]  ;;  %v1112_v50 = vpack.c.bf16 %v590_v44, %v588_v43  ;;  %v443_v51 = vld [vmem:[%s1914_s5 + $0x60] sm:$0xff] }
  0x55   :  { %v593_v47 = vld [vmem:[#allocation8 + $0x68] sm:$0xff]  ;;  %v595_v48 = vld [vmem:[#allocation8 + $0x78] sm:$0xff]  ;;  %v1050_v53 = vpack.c.bf16 %v446_v46, %v444_v45  ;;  %v592_v55 = vld [vmem:[#allocation8 + $0x60] sm:$0xff] }
  0x56   :  { %965 = vmatmul.mubr.msk.f32.vlgmr.msra.gmra.mrb[0].mxu0 %vm255_vm2, %v88_v24  ;;  %966 = vmatmul.mubr.msk.f32.vlgmr.msra.gmra.mrb[0].mxu1 %vm255_vm2, %v88_v24  ;;  %v445_v52 = vld [vmem:[%s1914_s5 + $0x70] sm:$0xff]  ;;  %v1114_v54 = vpack.c.bf16 %v595_v48, %v593_v47  ;;  %v448_v57 = vld [vmem:[%s1914_s5 + $0x88] sm:$0xff]  ;;  %v450_v58 = vld [vmem:[%s1914_s5 + $0x98] sm:$0xff] }
  0x57   :  { %1041 = vmatpush1.bf16.msra.mxu0 %v1040_v25  ;;  %1105 = vmatpush1.bf16.msra.mxu1 %v1104_v26  ;;  %v594_v56 = vld [vmem:[#allocation8 + $0x70] sm:$0xff]  ;;  %v597_v59 = vld [vmem:[#allocation8 + $0x88] sm:$0xff]  ;;  %v599_v60 = vld [vmem:[#allocation8 + $0x98] sm:$0xff]  ;;  %v1052_v61 = vpack.c.bf16 %v445_v52, %v443_v51  ;;  %v1054_v1 = vpack.c.bf16 %v450_v58, %v448_v57 }
  0x58   :  { %1043 = vmatprep.subr.bf16.mxu0 %v1042_v29  ;;  %1107 = vmatprep.subr.bf16.mxu1 %v1106_v30  ;;  %v1116_v62 = vpack.c.bf16 %v594_v56, %v592_v55  ;;  %v447_v63 = vld [vmem:[%s1914_s5 + $0x80] sm:$0xff]  ;;  %v449_v0 = vld [vmem:[%s1914_s5 + $0x90] sm:$0xff]  ;;  %v1118_v2 = vpack.c.bf16 %v599_v60, %v597_v59  ;;  %v452_v5 = vld [vmem:[%s1914_s5 + $0xa8] sm:$0xff] }
  0x59   :  { %v596_v3 = vld [vmem:[#allocation8 + $0x80] sm:$0xff]  ;;  %v598_v4 = vld [vmem:[#allocation8 + $0x90] sm:$0xff]  ;;  %v601_v7 = vld [vmem:[#allocation8 + $0xa8] sm:$0xff]  ;;  %v1056_v9 = vpack.c.bf16 %v449_v0, %v447_v63 }
  0x5a   :  { %v454_v6 = vld [vmem:[%s1914_s5 + $0xb8] sm:$0xff]  ;;  %v1120_v10 = vpack.c.bf16 %v598_v4, %v596_v3  ;;  %v451_v11 = vld [vmem:[%s1914_s5 + $0xa0] sm:$0xff]  ;;  %v453_v12 = vld [vmem:[%s1914_s5 + $0xb0] sm:$0xff] }
  0x5b   :  { %1045 = vmatpush1.bf16.msra.mxu0 %v1044_v37  ;;  %1109 = vmatpush1.bf16.msra.mxu1 %v1108_v38  ;;  %v603_v8 = vld [vmem:[#allocation8 + $0xb8] sm:$0xff]  ;;  %v1058_v13 = vpack.c.bf16 %v454_v6, %v452_v5  ;;  %v600_v15 = vld [vmem:[#allocation8 + $0xa0] sm:$0xff]  ;;  %v602_v16 = vld [vmem:[#allocation8 + $0xb0] sm:$0xff]  ;;  %v1060_v21 = vpack.c.bf16 %v453_v12, %v451_v11 }
  0x5c   :  { %1047 = vmatprep.subr.bf16.mxu0 %v1046_v41  ;;  %1111 = vmatprep.subr.bf16.mxu1 %v1110_v42  ;;  %v1122_v14 = vpack.c.bf16 %v603_v8, %v601_v7  ;;  %v456_v17 = vld [vmem:[%s1914_s5 + $0xc8] sm:$0xff]  ;;  %v458_v18 = vld [vmem:[%s1914_s5 + $0xd8] sm:$0xff]  ;;  %v1124_v22 = vpack.c.bf16 %v602_v16, %v600_v15  ;;  %v455_v23 = vld [vmem:[%s1914_s5 + $0xc0] sm:$0xff] }
  0x5d   :  { %v605_v19 = vld [vmem:[#allocation8 + $0xc8] sm:$0xff]  ;;  %v607_v20 = vld [vmem:[#allocation8 + $0xd8] sm:$0xff]  ;;  %v1062_v25 = vpack.c.bf16 %v458_v18, %v456_v17  ;;  %v604_v27 = vld [vmem:[#allocation8 + $0xc0] sm:$0xff] }
  0x5e   :  { %v457_v24 = vld [vmem:[%s1914_s5 + $0xd0] sm:$0xff]  ;;  %v1126_v26 = vpack.c.bf16 %v607_v20, %v605_v19  ;;  %v460_v29 = vld [vmem:[%s1914_s5 + $0xe8] sm:$0xff]  ;;  %v462_v30 = vld [vmem:[%s1914_s5 + $0xf8] sm:$0xff] }
  0x5f   :  { %1049 = vmatpush1.bf16.msra.mxu0 %v1048_v49  ;;  %1113 = vmatpush1.bf16.msra.mxu1 %v1112_v50  ;;  %v606_v28 = vld [vmem:[#allocation8 + $0xd0] sm:$0xff]  ;;  %v609_v31 = vld [vmem:[#allocation8 + $0xe8] sm:$0xff]  ;;  %v611_v32 = vld [vmem:[#allocation8 + $0xf8] sm:$0xff]  ;;  %v1064_v33 = vpack.c.bf16 %v457_v24, %v455_v23  ;;  %v1066_v37 = vpack.c.bf16 %v462_v30, %v460_v29 }
  0x60   :  { %1051 = vmatprep.subr.bf16.mxu0 %v1050_v53  ;;  %1115 = vmatprep.subr.bf16.mxu1 %v1114_v54  ;;  %v1128_v34 = vpack.c.bf16 %v606_v28, %v604_v27  ;;  %v459_v35 = vld [vmem:[%s1914_s5 + $0xe0] sm:$0xff]  ;;  %v461_v36 = vld [vmem:[%s1914_s5 + $0xf0] sm:$0xff]  ;;  %v1130_v38 = vpack.c.bf16 %v611_v32, %v609_v31  ;;  %v464_v41 = vld [vmem:[%s1914_s5 + $0x108] sm:$0xff] }
  0x61   :  { %v608_v39 = vld [vmem:[#allocation8 + $0xe0] sm:$0xff]  ;;  %v610_v40 = vld [vmem:[#allocation8 + $0xf0] sm:$0xff]  ;;  %v613_v43 = vld [vmem:[#allocation8 + $0x108] sm:$0xff]  ;;  %v1068_v45 = vpack.c.bf16 %v461_v36, %v459_v35 }
  0x62   :  { %v466_v42 = vld [vmem:[%s1914_s5 + $0x118] sm:$0xff]  ;;  %v1132_v46 = vpack.c.bf16 %v610_v40, %v608_v39  ;;  %v463_v47 = vld [vmem:[%s1914_s5 + $0x100] sm:$0xff]  ;;  %v465_v48 = vld [vmem:[%s1914_s5 + $0x110] sm:$0xff] }
  0x63   :  { %1053 = vmatpush1.bf16.msra.mxu0 %v1052_v61  ;;  %1117 = vmatpush1.bf16.msra.mxu1 %v1116_v62  ;;  %v615_v44 = vld [vmem:[#allocation8 + $0x118] sm:$0xff]  ;;  %v1070_v49 = vpack.c.bf16 %v466_v42, %v464_v41  ;;  %v612_v51 = vld [vmem:[#allocation8 + $0x100] sm:$0xff]  ;;  %v614_v52 = vld [vmem:[#allocation8 + $0x110] sm:$0xff]  ;;  %v1072_v57 = vpack.c.bf16 %v465_v48, %v463_v47 }
  0x64   :  { %1055 = vmatprep.subr.bf16.mxu0 %v1054_v1  ;;  %1119 = vmatprep.subr.bf16.mxu1 %v1118_v2  ;;  %v1134_v50 = vpack.c.bf16 %v615_v44, %v613_v43  ;;  %v468_v53 = vld [vmem:[%s1914_s5 + $0x128] sm:$0xff]  ;;  %v470_v54 = vld [vmem:[%s1914_s5 + $0x138] sm:$0xff]  ;;  %v1136_v58 = vpack.c.bf16 %v614_v52, %v612_v51  ;;  %v467_v59 = vld [vmem:[%s1914_s5 + $0x120] sm:$0xff] }
  0x65   :  { %v617_v55 = vld [vmem:[#allocation8 + $0x128] sm:$0xff]  ;;  %v619_v56 = vld [vmem:[#allocation8 + $0x138] sm:$0xff]  ;;  %v1074_v61 = vpack.c.bf16 %v470_v54, %v468_v53  ;;  %v616_v63 = vld [vmem:[#allocation8 + $0x120] sm:$0xff] }
  0x66   :  { %v469_v60 = vld [vmem:[%s1914_s5 + $0x130] sm:$0xff]  ;;  %v1138_v62 = vpack.c.bf16 %v619_v56, %v617_v55  ;;  %v472_v1 = vld [vmem:[%s1914_s5 + $0x148] sm:$0xff]  ;;  %v474_v2 = vld [vmem:[%s1914_s5 + $0x158] sm:$0xff] }
  0x67   :  { %1057 = vmatpush1.bf16.msra.mxu0 %v1056_v9  ;;  %1121 = vmatpush1.bf16.msra.mxu1 %v1120_v10  ;;  %v618_v0 = vld [vmem:[#allocation8 + $0x130] sm:$0xff]  ;;  %v621_v3 = vld [vmem:[#allocation8 + $0x148] sm:$0xff]  ;;  %v623_v4 = vld [vmem:[#allocation8 + $0x158] sm:$0xff]  ;;  %v1076_v5 = vpack.c.bf16 %v469_v60, %v467_v59  ;;  %v1078_v9 = vpack.c.bf16 %v474_v2, %v472_v1 }
  0x68   :  { %1059 = vmatprep.subr.bf16.mxu0 %v1058_v13  ;;  %1123 = vmatprep.subr.bf16.mxu1 %v1122_v14  ;;  %v1140_v6 = vpack.c.bf16 %v618_v0, %v616_v63  ;;  %v471_v7 = vld [vmem:[%s1914_s5 + $0x140] sm:$0xff]  ;;  %v473_v8 = vld [vmem:[%s1914_s5 + $0x150] sm:$0xff]  ;;  %v1142_v10 = vpack.c.bf16 %v623_v4, %v621_v3  ;;  %v476_v13 = vld [vmem:[%s1914_s5 + $0x168] sm:$0xff] }
  0x69   :  { %v620_v11 = vld [vmem:[#allocation8 + $0x140] sm:$0xff]  ;;  %v622_v12 = vld [vmem:[#allocation8 + $0x150] sm:$0xff]  ;;  %v625_v15 = vld [vmem:[#allocation8 + $0x168] sm:$0xff]  ;;  %v1080_v17 = vpack.c.bf16 %v473_v8, %v471_v7 }
  0x6a   :  { %v478_v14 = vld [vmem:[%s1914_s5 + $0x178] sm:$0xff]  ;;  %v1144_v18 = vpack.c.bf16 %v622_v12, %v620_v11  ;;  %v475_v19 = vld [vmem:[%s1914_s5 + $0x160] sm:$0xff]  ;;  %v477_v20 = vld [vmem:[%s1914_s5 + $0x170] sm:$0xff] }
  0x6b   :  { %1061 = vmatpush1.bf16.msra.mxu0 %v1060_v21  ;;  %1125 = vmatpush1.bf16.msra.mxu1 %v1124_v22  ;;  %v627_v16 = vld [vmem:[#allocation8 + $0x178] sm:$0xff]  ;;  %v1082_v21 = vpack.c.bf16 %v478_v14, %v476_v13  ;;  %v624_v23 = vld [vmem:[#allocation8 + $0x160] sm:$0xff]  ;;  %v626_v24 = vld [vmem:[#allocation8 + $0x170] sm:$0xff]  ;;  %v1084_v29 = vpack.c.bf16 %v477_v20, %v475_v19 }
  0x6c   :  { %1063 = vmatprep.subr.bf16.mxu0 %v1062_v25  ;;  %1127 = vmatprep.subr.bf16.mxu1 %v1126_v26  ;;  %v1146_v22 = vpack.c.bf16 %v627_v16, %v625_v15  ;;  %v480_v25 = vld [vmem:[%s1914_s5 + $0x188] sm:$0xff]  ;;  %v482_v26 = vld [vmem:[%s1914_s5 + $0x198] sm:$0xff]  ;;  %v1148_v30 = vpack.c.bf16 %v626_v24, %v624_v23  ;;  %v479_v31 = vld [vmem:[%s1914_s5 + $0x180] sm:$0xff] }
  0x6d   :  { %v629_v27 = vld [vmem:[#allocation8 + $0x188] sm:$0xff]  ;;  %v631_v28 = vld [vmem:[#allocation8 + $0x198] sm:$0xff]  ;;  %v628_v35 = vld [vmem:[#allocation8 + $0x180] sm:$0xff] }
  0x6e   :  { %v481_v32 = vld [vmem:[%s1914_s5 + $0x190] sm:$0xff]  ;;  %v635_v40 = vld [vmem:[#allocation8 + $0x1b8] sm:$0xff]  ;;  %v632_v47 = vld [vmem:[#allocation8 + $0x1a0] sm:$0xff] }
  0x6f   :  { %1065 = vmatpush1.bf16.msra.mxu0 %v1064_v33  ;;  %1129 = vmatpush1.bf16.msra.mxu1 %v1128_v34  ;;  %v1086_v33 = vpack.c.bf16 %v482_v26, %v480_v25  ;;  %v1150_v34 = vpack.c.bf16 %v631_v28, %v629_v27  ;;  %v630_v36 = vld [vmem:[#allocation8 + $0x190] sm:$0xff]  ;;  %v633_v39 = vld [vmem:[#allocation8 + $0x1a8] sm:$0xff]  ;;  %v1088_v41 = vpack.c.bf16 %v481_v32, %v479_v31  ;;  %v483_v43 = vld [vmem:[%s1914_s5 + $0x1a0] sm:$0xff] }
  0x70   :  { %1067 = vmatprep.subr.bf16.mxu0 %v1066_v37  ;;  %1131 = vmatprep.subr.bf16.mxu1 %v1130_v38  ;;  %v484_v37 = vld [vmem:[%s1914_s5 + $0x1a8] sm:$0xff]  ;;  %v486_v38 = vld [vmem:[%s1914_s5 + $0x1b8] sm:$0xff]  ;;  %v1152_v42 = vpack.c.bf16 %v630_v36, %v628_v35  ;;  %v485_v44 = vld [vmem:[%s1914_s5 + $0x1b0] sm:$0xff] }
  0x71   :  { %v634_v48 = vld [vmem:[#allocation8 + $0x1b0] sm:$0xff]  ;;  %v637_v51 = vld [vmem:[#allocation8 + $0x1c8] sm:$0xff]  ;;  %v639_v52 = vld [vmem:[#allocation8 + $0x1d8] sm:$0xff]  ;;  %v1092_v53 = vpack.c.bf16 %v485_v44, %v483_v43 }
  0x72   :  { %v1156_v54 = vpack.c.bf16 %v634_v48, %v632_v47  ;;  %v1158_v56 = vpack.c.bf16 %v639_v52, %v637_v51  ;;  %v636_v59 = vld [vmem:[#allocation8 + $0x1c0] sm:$0xff]  ;;  %v494_v0 = vld [vmem:[%s1914_s5 + $0x1f8] sm:$0xff]  ;;  %v641_v1 = vld [vmem:[#allocation8 + $0x1e8] sm:$0xff] }
  0x73   :  { %1069 = vmatpush1.bf16.msra.mxu0 %v1068_v45  ;;  %1133 = vmatpush1.bf16.msra.mxu1 %v1132_v46  ;;  %v1090_v45 = vpack.c.bf16 %v486_v38, %v484_v37  ;;  %v1154_v46 = vpack.c.bf16 %v635_v40, %v633_v39  ;;  %v492_v63 = vld [vmem:[%s1914_s5 + $0x1e8] sm:$0xff]  ;;  %v643_v3 = vld [vmem:[#allocation8 + $0x1f8] sm:$0xff]  ;;  %v747_v38 = vld [vmem:[%s1918_s9 + $0x90] sm:$0xff] }
  0x74   :  { %1071 = vmatprep.subr.bf16.mxu0 %v1070_v49  ;;  %1135 = vmatprep.subr.bf16.mxu1 %v1134_v50  ;;  %v488_v49 = vld [vmem:[%s1914_s5 + $0x1c8] sm:$0xff]  ;;  %v490_v50 = vld [vmem:[%s1914_s5 + $0x1d8] sm:$0xff]  ;;  %v1098_v2 = vpack.c.bf16 %v494_v0, %v492_v63  ;;  %v491_v4 = vld [vmem:[%s1914_s5 + $0x1e0] sm:$0xff] }
  0x75   :  { %v1094_v55 = vpack.c.bf16 %v490_v50, %v488_v49  ;;  %v640_v8 = vld [vmem:[#allocation8 + $0x1e0] sm:$0xff]  ;;  %v780_v43 = vld [vmem:[%s1918_s9 + $0x198] sm:$0xff]  ;;  %v731_v48 = vld [vmem:[%s1918_s9 + $0x10] sm:$0xff] }
  0x76   :  { %v745_v11 = vld [vmem:[%s1918_s9 + $0x80] sm:$0xff]  ;;  %v746_v12 = vld [vmem:[%s1918_s9 + $0x88] sm:$0xff]  ;;  %v732_v49 = vld [vmem:[%s1918_s9 + $0x18] sm:$0xff] }
  0x77   :  { %1073 = vmatpush1.bf16.msra.mxu0 %v1072_v57  ;;  %1137 = vmatpush1.bf16.msra.mxu1 %v1136_v58  ;;  %v487_v57 = vld [vmem:[%s1914_s5 + $0x1c0] sm:$0xff]  ;;  %v489_v58 = vld [vmem:[%s1914_s5 + $0x1d0] sm:$0xff]  ;;  %v1166_v14 = vpack.c.bf16 %v746_v12, %v745_v11  ;;  %v778_v15 = vld [vmem:[%s1918_s9 + $0x188] sm:$0xff] }
  0x78   :  { %1075 = vmatprep.subr.bf16.mxu0 %v1074_v61  ;;  %1139 = vmatprep.subr.bf16.mxu1 %v1138_v62  ;;  %v1096_v60 = vpack.c.bf16 %v489_v58, %v487_v57  ;;  %v638_v61 = vld [vmem:[#allocation8 + $0x1d0] sm:$0xff]  ;;  %v777_v13 = vld [vmem:[%s1918_s9 + $0x180] sm:$0xff]  ;;  %v730_v31 = vld [vmem:[%s1918_s9 + $0x8] sm:$0xff] }
  0x79   :  { %v1160_v62 = vpack.c.bf16 %v638_v61, %v636_v59  ;;  %v1198_v16 = vpack.c.bf16 %v778_v15, %v777_v13  ;;  %v761_v36 = vld [vmem:[%s1918_s9 + $0x100] sm:$0xff]  ;;  %v762_v37 = vld [vmem:[%s1918_s9 + $0x108] sm:$0xff]  ;;  %v736_v11 = vld [vmem:[%s1918_s9 + $0x38] sm:$0xff] }
  0x7a   :  { %v1200_v47 = vpack.c.bf16 %v762_v37, %v761_v36  ;;  %v750_v57 = vld [vmem:[%s1918_s9 + $0xa8] sm:$0xff]  ;;  %v781_v58 = vld [vmem:[%s1918_s9 + $0x1a0] sm:$0xff]  ;;  %v768_v15 = vld [vmem:[%s1918_s9 + $0x138] sm:$0xff] }
  0x7b   :  { %1077 = vmatpush1.bf16.msra.mxu0 %v1076_v5  ;;  %1141 = vmatpush1.bf16.msra.mxu1 %v1140_v6  ;;  %v493_v5 = vld [vmem:[%s1914_s5 + $0x1f0] sm:$0xff]  ;;  %v1162_v6 = vpack.c.bf16 %v643_v3, %v641_v1  ;;  %v782_v59 = vld [vmem:[%s1918_s9 + $0x1a8] sm:$0xff]  ;;  %v740_v37 = vld [vmem:[%s1918_s9 + $0x58] sm:$0xff] }
  0x7c   :  { %1079 = vmatprep.subr.bf16.mxu0 %v1078_v9  ;;  %1143 = vmatprep.subr.bf16.mxu1 %v1142_v10  ;;  %v1100_v7 = vpack.c.bf16 %v493_v5, %v491_v4  ;;  %v642_v9 = vld [vmem:[#allocation8 + $0x1f0] sm:$0xff]  ;;  %v734_v63 = vld [vmem:[%s1918_s9 + $0x28] sm:$0xff]  ;;  %v1206_v1 = vpack.c.bf16 %v782_v59, %v781_v58 }
  0x7d   :  { %v1164_v10 = vpack.c.bf16 %v642_v9, %v640_v8  ;;  %v766_v3 = vld [vmem:[%s1918_s9 + $0x128] sm:$0xff]  ;;  %v751_v4 = vld [vmem:[%s1918_s9 + $0xb0] sm:$0xff]  ;;  %v752_v5 = vld [vmem:[%s1918_s9 + $0xb8] sm:$0xff] }
  0x7e   :  { %v1178_v12 = vpack.c.bf16 %v752_v5, %v751_v4  ;;  %v739_v36 = vld [vmem:[%s1918_s9 + $0x50] sm:$0xff]  ;;  %v495_v4 = vld [vmem:[#allocation7] sm:$0x3]  ;;  %v644_v5 = vld [vmem:[%s1917_s8] sm:$0x3] }
  0x7f   :  { %1081 = vmatpush1.bf16.msra.mxu0 %v1080_v17  ;;  %1145 = vmatpush1.bf16.msra.mxu1 %v1144_v18  ;;  %v403_v17 = vlaneseq  ;;  %v791_v58 = vld [vmem:[%s1918_s9 + $0x1f0] sm:$0xff] }
  0x80   :  { %1083 = vmatprep.subr.bf16.mxu0 %v1082_v21  ;;  %1147 = vmatprep.subr.bf16.mxu1 %v1146_v22  ;;  %v401_v21 = vld [vmem:[%s1913_s4] sm:$0xf] }
  0x81   :  { %v404_v18 = vshrl.u32 %v403_v17, 7  ;;  %v754_v17 = vld [vmem:[%s1918_s9 + $0xc8] sm:$0xff] }
  0x83   :  { %1085 = vmatpush1.bf16.msra.mxu0 %v1084_v29  ;;  %1149 = vmatpush1.bf16.msra.mxu1 %v1148_v30  ;;  %v1698_v19 = vsub.s32 0, %v404_v18  ;;  %v413_v20 = vsub.s32 2, %v404_v18  ;;  %v1703_v22 = vsub.s32 1, %v404_v18  ;;  %v417_v23 = vsub.s32 3, %v404_v18  ;;  %v729_v30 = vld [vmem:[%s1918_s9] sm:$0xff] }
  0x84   :  { %1087 = vmatprep.subr.bf16.mxu0 %v1086_v33  ;;  %1151 = vmatprep.subr.bf16.mxu1 %v1150_v34  ;;  %v785_v18 = vld [vmem:[%s1918_s9 + $0x1c0] sm:$0xff] }
  0x85   :  { %v406_v24 = vrot.slane %v401_v21, %v1698_v19  ;;  %v414_v25 = vrot.slane %v401_v21, %v413_v20  ;;  %v410_v26 = vrot.slane %v401_v21, %v1703_v22  ;;  %v418_v27 = vrot.slane %v401_v21, %v417_v23  ;;  %v786_v20 = vld [vmem:[%s1918_s9 + $0x1c8] sm:$0xff] }
  0x87   :  { %1089 = vmatpush1.bf16.msra.mxu0 %v1088_v41  ;;  %1153 = vmatpush1.bf16.msra.mxu1 %v1152_v42  ;;  %v748_v41 = vld [vmem:[%s1918_s9 + $0x98] sm:$0xff]  ;;  %v779_v42 = vld [vmem:[%s1918_s9 + $0x190] sm:$0xff] }
  0x88   :  { %1091 = vmatprep.subr.bf16.mxu0 %v1090_v45  ;;  %1155 = vmatprep.subr.bf16.mxu1 %v1154_v46  ;;  %v1168_v46 = vpack.c.bf16 %v730_v31, %v729_v30  ;;  %v1170_v52 = vpack.c.bf16 %v748_v41, %v747_v38  ;;  %v755_v30 = vld [vmem:[%s1918_s9 + $0xd0] sm:$0xff]  ;;  %v756_v31 = vld [vmem:[%s1918_s9 + $0xd8] sm:$0xff] }
  0x89   :  { %v1186_v38 = vpack.c.bf16 %v756_v31, %v755_v30  ;;  %v772_v41 = vld [vmem:[%s1918_s9 + $0x158] sm:$0xff] }
  0x8b   :  { %1093 = vmatpush1.bf16.msra.mxu0 %v1092_v53  ;;  %1157 = vmatpush1.bf16.msra.mxu1 %v1156_v54  ;;  %v1202_v53 = vpack.c.bf16 %v780_v43, %v779_v42  ;;  %v763_v54 = vld [vmem:[%s1918_s9 + $0x110] sm:$0xff]  ;;  %v757_v42 = vld [vmem:[%s1918_s9 + $0xe0] sm:$0xff]  ;;  %v758_v43 = vld [vmem:[%s1918_s9 + $0xe8] sm:$0xff] }
  0x8c   :  { %1095 = vmatprep.subr.bf16.mxu0 %v1094_v55  ;;  %1159 = vmatprep.subr.bf16.mxu1 %v1158_v56  ;;  %v764_v55 = vld [vmem:[%s1918_s9 + $0x118] sm:$0xff]  ;;  %v749_v56 = vld [vmem:[%s1918_s9 + $0xa0] sm:$0xff] }
  0x8d   :  { %v1204_v61 = vpack.c.bf16 %v764_v55, %v763_v54  ;;  %v1174_v0 = vpack.c.bf16 %v750_v57, %v749_v56  ;;  %v774_v54 = vld [vmem:[%s1918_s9 + $0x168] sm:$0xff]  ;;  %v759_v56 = vld [vmem:[%s1918_s9 + $0xf0] sm:$0xff]  ;;  %v760_v57 = vld [vmem:[%s1918_s9 + $0xf8] sm:$0xff] }
  0x8e   :  { %v1194_v59 = vpack.c.bf16 %v760_v57, %v759_v56 }
  0x8f   :  { %1097 = vmatpush1.bf16.msra.mxu0 %v1096_v60  ;;  %1161 = vmatpush1.bf16.msra.mxu1 %v1160_v62  ;;  %v1172_v60 = vpack.c.bf16 %v732_v49, %v731_v48  ;;  %v733_v62 = vld [vmem:[%s1918_s9 + $0x20] sm:$0xff]  ;;  %v1190_v48 = vpack.c.bf16 %v758_v43, %v757_v42 }
  0x90   :  { %1099 = vmatprep.subr.bf16.mxu0 %v1098_v2  ;;  %1163 = vmatprep.subr.bf16.mxu1 %v1162_v6  ;;  %v765_v2 = vld [vmem:[%s1918_s9 + $0x120] sm:$0xff]  ;;  %v783_v6 = vld [vmem:[%s1918_s9 + $0x1b0] sm:$0xff]  ;;  %v1176_v8 = vpack.c.bf16 %v734_v63, %v733_v62  ;;  %v744_v62 = vld [vmem:[%s1918_s9 + $0x78] sm:$0xff] }
  0x91   :  { %v1208_v9 = vpack.c.bf16 %v766_v3, %v765_v2  ;;  %v776_v2 = vld [vmem:[%s1918_s9 + $0x178] sm:$0xff] }
  0x93   :  { %1101 = vmatpush1.bf16.msra.mxu0 %v1100_v7  ;;  %1165 = vmatpush1.bf16.msra.mxu1 %v1164_v10  ;;  %v784_v7 = vld [vmem:[%s1918_s9 + $0x1b8] sm:$0xff]  ;;  %v735_v10 = vld [vmem:[%s1918_s9 + $0x30] sm:$0xff] }
  0x94   :  { %1167 = vmatprep.subr.bf16.mxu0 %v1166_v14  ;;  %1199 = vmatprep.subr.bf16.mxu1 %v1198_v16  ;;  %v1210_v13 = vpack.c.bf16 %v784_v7, %v783_v6  ;;  %v767_v14 = vld [vmem:[%s1918_s9 + $0x130] sm:$0xff]  ;;  %v753_v16 = vld [vmem:[%s1918_s9 + $0xc0] sm:$0xff]  ;;  %v1180_v21 = vpack.c.bf16 %v736_v11, %v735_v10  ;;  %v500_v6 = vrot.slane %v495_v4, %v1698_v19 }
  0x95   :  { %v1212_v23 = vpack.c.bf16 %v768_v15, %v767_v14  ;;  %v649_v7 = vrot.slane %v644_v5, %v1698_v19 }
 0x129   :  { %v325_v28 = vpop.f32.mrb[0].mxu0  ;;  %v396_v29 = vpop.f32.mrb[0].mxu1 }
 0x12a   :  { %v423_v32 = vadd.f32 %v406_v24, %v325_v28  ;;  %v425_v33 = vadd.f32 %v414_v25, %v396_v29  ;;  %v327_v34 = vpop.f32.mrb[1].mxu0  ;;  %v398_v35 = vpop.f32.mrb[1].mxu1  ;;  %v737_v24 = vld [vmem:[%s1918_s9 + $0x40] sm:$0xff]  ;;  %v738_v25 = vld [vmem:[%s1918_s9 + $0x48] sm:$0xff] }
 0x12b   :  { %v424_v39 = vadd.f32 %v410_v26, %v327_v34  ;;  %v426_v40 = vadd.f32 %v418_v27, %v398_v35  ;;  %v1182_v26 = vpack.c.bf16 %v754_v17, %v753_v16  ;;  %v1214_v27 = vpack.c.bf16 %v786_v20, %v785_v18  ;;  %v769_v28 = vld [vmem:[%s1918_s9 + $0x140] sm:$0xff]  ;;  %v770_v29 = vld [vmem:[%s1918_s9 + $0x148] sm:$0xff] }
 0x12c   :  { %v427_v50 = vmax.f32 %v423_v32, 0.0  ;;  %v429_v51 = vmax.f32 %v425_v33, 0.0  ;;  %v787_v32 = vld [vmem:[%s1918_s9 + $0x1d0] sm:$0xff]  ;;  %v788_v33 = vld [vmem:[%s1918_s9 + $0x1d8] sm:$0xff]  ;;  %v1184_v34 = vpack.c.bf16 %v738_v25, %v737_v24  ;;  %v1216_v35 = vpack.c.bf16 %v770_v29, %v769_v28 }
 0x12d   :  { %v428_v44 = vmax.f32 %v424_v39, 0.0  ;;  %v430_v45 = vmax.f32 %v426_v40, 0.0  ;;  %v1218_v39 = vpack.c.bf16 %v788_v33, %v787_v32  ;;  %v771_v40 = vld [vmem:[%s1918_s9 + $0x150] sm:$0xff] }
 0x12f   :  { %571 = vmatprep.mubr.f32.mxu0 %v428_v44  ;;  %720 = vmatprep.mubr.f32.mxu1 %v430_v45  ;;  %v789_v44 = vld [vmem:[%s1918_s9 + $0x1e0] sm:$0xff]  ;;  %v790_v45 = vld [vmem:[%s1918_s9 + $0x1e8] sm:$0xff] }
 0x130   :  { %572 = vmatmul.mubr.f32.vlgmr.msra.gmra.mrb[2].mxu0 %v427_v50  ;;  %721 = vmatmul.mubr.f32.vlgmr.msra.gmra.mrb[2].mxu1 %v429_v51  ;;  %v1222_v49 = vpack.c.bf16 %v790_v45, %v789_v44  ;;  %v741_v50 = vld [vmem:[%s1918_s9 + $0x60] sm:$0xff]  ;;  %v742_v51 = vld [vmem:[%s1918_s9 + $0x68] sm:$0xff] }
 0x131   :  { %1169 = vmatpush3.bf16.msra.mxu0 %v1168_v46  ;;  %1201 = vmatpush3.bf16.msra.mxu1 %v1200_v47  ;;  %v1188_v46 = vpack.c.bf16 %v740_v37, %v739_v36  ;;  %v1220_v47 = vpack.c.bf16 %v772_v41, %v771_v40 }
 0x132   :  { %1171 = vmatprep.subr.bf16.mxu0 %v1170_v52  ;;  %1203 = vmatprep.subr.bf16.mxu1 %v1202_v53  ;;  %v773_v52 = vld [vmem:[%s1918_s9 + $0x160] sm:$0xff]  ;;  %v1192_v53 = vpack.c.bf16 %v742_v51, %v741_v50 }
 0x133   :  { %v1224_v55 = vpack.c.bf16 %v774_v54, %v773_v52 }
 0x135   :  { %1173 = vmatpush3.bf16.msra.mxu0 %v1172_v60  ;;  %1205 = vmatpush3.bf16.msra.mxu1 %v1204_v61  ;;  %v792_v60 = vld [vmem:[%s1918_s9 + $0x1f8] sm:$0xff]  ;;  %v743_v61 = vld [vmem:[%s1918_s9 + $0x70] sm:$0xff] }
 0x136   :  { %1175 = vmatprep.subr.bf16.mxu0 %v1174_v0  ;;  %1207 = vmatprep.subr.bf16.mxu1 %v1206_v1  ;;  %v1226_v63 = vpack.c.bf16 %v792_v60, %v791_v58  ;;  %v1196_v0 = vpack.c.bf16 %v744_v62, %v743_v61  ;;  %v775_v1 = vld [vmem:[%s1918_s9 + $0x170] sm:$0xff] }
 0x137   :  { %v1228_v3 = vpack.c.bf16 %v776_v2, %v775_v1 }
 0x139   :  { %1177 = vmatpush3.bf16.msra.mxu0 %v1176_v8  ;;  %1209 = vmatpush3.bf16.msra.mxu1 %v1208_v9  ;;  %v504_v8 = vrot.slane %v495_v4, %v1703_v22  ;;  %v653_v9 = vrot.slane %v644_v5, %v1703_v22  ;;  %v967_v22 = vld [vmem:[%s1919_s10] ss:$0 sm:$0xff] }
 0x13a   :  { %1179 = vmatprep.subr.bf16.mxu0 %v1178_v12  ;;  %1211 = vmatprep.subr.bf16.mxu1 %v1210_v13 }
 0x13d   :  { %1181 = vmatpush3.bf16.msra.mxu0 %v1180_v21  ;;  %1213 = vmatpush3.bf16.msra.mxu1 %v1212_v23 }
 0x13e   :  { %1183 = vmatprep.subr.bf16.mxu0 %v1182_v26  ;;  %1215 = vmatprep.subr.bf16.mxu1 %v1214_v27 }
 0x141   :  { %1185 = vmatpush3.bf16.msra.mxu0 %v1184_v34  ;;  %1217 = vmatpush3.bf16.msra.mxu1 %v1216_v35 }
 0x142   :  { %1187 = vmatprep.subr.bf16.mxu0 %v1186_v38  ;;  %1219 = vmatprep.subr.bf16.mxu1 %v1218_v39 }
 0x145   :  { %1189 = vmatpush3.bf16.msra.mxu0 %v1188_v46  ;;  %1221 = vmatpush3.bf16.msra.mxu1 %v1220_v47 }
 0x146   :  { %1191 = vmatprep.subr.bf16.mxu0 %v1190_v48  ;;  %1223 = vmatprep.subr.bf16.mxu1 %v1222_v49 }
 0x149   :  { %1193 = vmatpush3.bf16.msra.mxu0 %v1192_v53  ;;  %1225 = vmatpush3.bf16.msra.mxu1 %v1224_v55 }
 0x14a   :  { %1195 = vmatprep.subr.bf16.mxu0 %v1194_v59  ;;  %1227 = vmatprep.subr.bf16.mxu1 %v1226_v63 }
 0x14d   :  { %1197 = vmatpush3.bf16.msra.mxu0 %v1196_v0  ;;  %1229 = vmatpush3.bf16.msra.mxu1 %v1228_v3 }
 0x203   :  { %v573_v10 = vpop.f32.mrb[2].mxu0  ;;  %v722_v11 = vpop.f32.mrb[2].mxu1 }
 0x204   :  { %v574_v12 = vadd.f32 %v573_v10, %v500_v6  ;;  %v723_v13 = vadd.f32 %v722_v11, %v649_v7  ;;  %v575_v14 = vpop.f32.mrb[3].mxu0  ;;  %v724_v15 = vpop.f32.mrb[3].mxu1 }
 0x205   :  { %v576_v16 = vadd.f32 %v575_v14, %v504_v8  ;;  %v725_v17 = vadd.f32 %v724_v15, %v653_v9 }
 0x206   :  { %v578_v21 = vmax.f32 %v574_v12, 0.0  ;;  %v727_v23 = vmax.f32 %v723_v13, 0.0 }
 0x207   :  { %v579_v18 = vmax.f32 %v576_v16, 0.0  ;;  %v728_v20 = vmax.f32 %v725_v17, 0.0 }
 0x209   :  { %864 = vmatprep.mubr.f32.mxu0 %v579_v18  ;;  %934 = vmatprep.mubr.f32.mxu1 %v728_v20 }
 0x20a   :  { %865 = vmatmul.mubr.f32.vlgmr.msra.gmra.mrb[4].mxu0 %v578_v21  ;;  %935 = vmatmul.mubr.f32.vlgmr.msra.gmra.mrb[4].mxu1 %v727_v23 }
 0x2dd   :  { %v1000_v19 = vpop.f32.mrb[4].mxu0  ;;  %v1035_v24 = vpop.f32.mrb[4].mxu1 }
 0x2de   :  { %v1001_v25 = vpop.f32.mrb[5].mxu0  ;;  %v1036_v26 = vpop.f32.mrb[5].mxu1 }
 0x2df   :  { %v1002_v27 = vadd.f32 %v1001_v25, %v1000_v19  ;;  %v1037_v28 = vadd.f32 %v1036_v26, %v1035_v24 }
 0x2e1   :  { %v867_v29 = vadd.f32 %v1002_v27, %v967_v22 }
 0x2e3   :  { %v937_v30 = vadd.f32 %v1037_v28, %v867_v29 }
 0x2e5   :  { %941 = vst.msk [vmem:[#allocation10] sm:$0x3] %vm940_vm3, %v937_v30 }
 0x2e6   :  { %1343 = shalt.err (!%p1340_p8)
}
 0x2e7   :  { %s1344_s20 = scalar_lea.hbm %s1920_s11, 32 }
 0x2e8   :  { %p1345_p9 = scmp.ne.s32.totalorder %s1920_s11, %s1344_s20  ;;  %p1348_p10 = scmp.lt.u32.totalorder %s1344_s20, %s1920_s11 }
 0x2ea   :  { %p1350_p11 = pnand %p1348_p10, %p1345_p9 }
 0x2ec   :  { %1353 = shalt.err (!%p1350_p11)
}
 0x2ed   :  { %951 = dma.vmem_to_hbm [thread:$0]  %s949_s13, 32, %s1920_s11, [#allocation4]  }
 0x2ee   :  { %1360 = dma.done.wait [#allocation4], 32  }
 0x2ef   :  { %1361 = vsyncadd [#allocation4], 4294967264 }
 0x2f0   :  { %955 = vsyncpa [#allocation3], 1 }
 0x2f1   :  { %956 = vsyncpa [#allocation6], 1 }
 0x2f2   :  { %957 = vsyncpa [#allocation9], 1 }
 0x2f3   :  { %958 = vsyncpa [#allocation4], 1 }

</bundles_post_ra>
